<compile_context>
chip_gen: v7x
topology: tpu7x:2x2x1
jax: 0.10.0
libtpu: 0.0.40
codegen_flags: <defaults>
</compile_context>

<pallas_src>
import numpy as np
import jax
import jax.numpy as jnp
from jax import lax
from jax.experimental import pallas as pl
from jax.experimental.pallas import tpu as pltpu


def fm_kernel(wb_ref, embed_ref, fc_ref, out_ref):
    # wb_ref:    SMEM (2,)          -> [linear weight, linear bias]
    # embed_ref: VMEM (F, TB, K)    -> gathered embeddings, field-major
    # fc_ref:    VMEM (F, TB)       -> gathered first-order weights, field-major
    # out_ref:   VMEM (1, TB)       -> per-row scores (lane-dense)
    n_fields, tb, k = embed_ref.shape

    def body(f, carry):
        s, sq = carry
        e = embed_ref[f].astype(jnp.float32)                  # (TB, K)
        return s + e, sq + e * e

    zeros = jnp.zeros((tb, k), jnp.float32)
    s, sq = lax.fori_loop(0, n_fields, body, (zeros, zeros), unroll=True)

    # 0.5 * sum_K((sum_F e)^2 - sum_F e^2)  -> (TB,)
    interaction = 0.5 * jnp.sum(s * s - sq, axis=1)
    # first-order term: sum over fields, already lane-major      -> (TB,)
    fc_sum = jnp.sum(fc_ref[...].astype(jnp.float32), axis=0)
    score = fc_sum * wb_ref[0] + wb_ref[1] + interaction
    out_ref[...] = score.reshape(1, tb)


def _pick_batch_tile(batch, n_fields, n_factors, max_tb=512):
    """Batch tile: multiple of 128; two embed buffers must stay small on v7x."""
    budget_bytes = 8 * 1024 * 1024                  # for the double-buffered embed stream
    per_row = n_fields * n_factors * 4 * 2          # f32, x2 pipeline buffers
    tb = (budget_bytes // per_row) // 128 * 128
    tb = max(128, min(max_tb, tb))
    # no point tiling wider than the 128-padded batch itself
    tb = min(tb, pl.cdiv(batch, 128) * 128)
    return max(128, tb)


def fm_forward(x_idx, offsets, embedding_table, fc_table, lin_w, lin_b):
    """x_idx: (B, F) int32 per-field indices. Returns (B,) float32 scores."""
    batch, n_fields = x_idx.shape
    n_factors = embedding_table.shape[1]

    idx = x_idx + offsets[None, :]                        # (B, F) global feature ids
    idx_t = idx.T                                         # (F, B)
    # Field-major gathers (index-order change only, no extra transpose pass over data).
    embed_fm = jnp.take(embedding_table, idx_t, axis=0)   # (F, B, K)
    fc_fm = jnp.take(fc_table[:, 0], idx_t, axis=0)       # (F, B)

    tb = _pick_batch_tile(batch, n_fields, n_factors)
    n_tiles = pl.cdiv(batch, tb)
    b_pad = n_tiles * tb
    if b_pad != batch:                                    # pad so the grid tiles evenly
        embed_fm = jnp.pad(embed_fm, ((0, 0), (0, b_pad - batch), (0, 0)))
        fc_fm = jnp.pad(fc_fm, ((0, 0), (0, b_pad - batch)))

    wb = jnp.stack([lin_w.reshape(()), lin_b.reshape(())]).astype(jnp.float32)  # (2,)

    itemsize = 4
    cost = pl.CostEstimate(
        flops=int(3 * b_pad * n_fields * n_factors + 5 * b_pad * n_factors),
        transcendentals=0,
        bytes_accessed=int(
            b_pad * n_fields * n_factors * itemsize       # embeddings
            + b_pad * n_fields * itemsize                 # fc values
            + b_pad * itemsize                            # output
        ),
    )

    out = pl.pallas_call(
        fm_kernel,
        out_shape=jax.ShapeDtypeStruct((n_tiles, tb), jnp.float32),
        grid=(n_tiles,),
        in_specs=[
            pl.BlockSpec(memory_space=pltpu.MemorySpace.SMEM),              # wb scalars
            pl.BlockSpec((n_fields, tb, n_factors), lambda i: (0, i, 0)),   # embeddings
            pl.BlockSpec((n_fields, tb), lambda i: (0, i)),                 # fc values
        ],
        out_specs=pl.BlockSpec((1, tb), lambda i: (i, 0)),
        compiler_params=pltpu.CompilerParams(
            dimension_semantics=("parallel",),    # shard batch tiles across TensorCores
            vmem_limit_bytes=32 * 1024 * 1024,
        ),
        cost_estimate=cost,
    )(wb, embed_fm, fc_fm)

    return out.reshape(-1)[:batch]                         # x.view(-1)


def fm_reference(x_idx, offsets, embedding_table, fc_table, lin_w, lin_b):
    idx = x_idx + offsets[None, :]
    embed = jnp.take(embedding_table, idx, axis=0)         # (B, F, K)
    square_of_sum = jnp.sum(embed, axis=1) ** 2
    sum_of_square = jnp.sum(embed ** 2, axis=1)
    fc = jnp.take(fc_table, idx, axis=0)                   # (B, F, 1)
    lin = jnp.sum(fc, axis=1) * lin_w.reshape(()) + lin_b.reshape(())  # (B, 1)
    out = lin + 0.5 * jnp.sum(square_of_sum - sum_of_square, axis=1, keepdims=True)
    return out.reshape(-1)


if __name__ == "__main__":
    # Small, deterministic setup consistent with FM.__init__
    feature_dims = (10, 20, 30, 40)                        # 4 categorical fields
    n_factors = 128
    batch = 8
    n_fields = len(feature_dims)
    n_features = int(sum(feature_dims))
    offsets = jnp.array((0, *np.cumsum(feature_dims)[:-1]), dtype=jnp.int32)

    key = jax.random.PRNGKey(0)
    k_emb, k_fc, k_w, k_b, k_x = jax.random.split(key, 5)

    embedding_table = 0.1 * jax.random.normal(k_emb, (n_features, n_factors), jnp.float32)
    fc_table = 0.1 * jax.random.normal(k_fc, (n_features, 1), jnp.float32)
    lin_w = jax.random.normal(k_w, (1, 1), jnp.float32)
    lin_b = jax.random.normal(k_b, (1,), jnp.float32)

    # per-field indices within each field's vocabulary
    x_cols = []
    for kf, dim in zip(jax.random.split(k_x, n_fields), feature_dims):
        x_cols.append(jax.random.randint(kf, (batch,), 0, dim, dtype=jnp.int32))
    x_idx = jnp.stack(x_cols, axis=1)                      # (B, F) int32

    out = fm_forward(x_idx, offsets, embedding_table, fc_table, lin_w, lin_b)
    out = jax.block_until_ready(out)

    ref = fm_reference(x_idx, offsets, embedding_table, fc_table, lin_w, lin_b)
    assert out.shape == (batch,)
    np.testing.assert_allclose(np.asarray(out), np.asarray(ref), rtol=1e-5, atol=1e-5)

    print("KERNEL_OK")
</pallas_src>

<mosaic_0001>
module attributes {stable_mosaic.version = 11 : i64} {
  func.func @fm_kernel(%arg0: i32, %arg1: memref<2xf32, #tpu.memory_space<smem>>, %arg2: memref<4x128x128xf32, #tpu.memory_space<vmem>>, %arg3: memref<4x128xf32, #tpu.memory_space<vmem>>, %arg4: memref<1x128xf32, #tpu.memory_space<vmem>>) attributes {dimension_semantics = [#tpu.dimension_semantics<parallel>], iteration_bounds = array<i64: 1>, scalar_prefetch = 0 : i64, scratch_operands = 0 : i64, tpu.core_type = #tpu.core_type<tc>, window_params = [{transform_indices = @transform_0, window_bounds = array<i64: 2>}, {transform_indices = @transform_1, window_bounds = array<i64: 4, 128, 128>}, {transform_indices = @transform_2, window_bounds = array<i64: 4, 128>}, {transform_indices = @transform_3, window_bounds = array<i64: 1, 128>}]} {
    %cst = arith.constant 0.000000e+00 : f32
    %0 = vector.broadcast %cst : f32 to vector<128x128xf32>
    %c0_i32 = arith.constant 0 : i32
    %1 = arith.index_cast %c0_i32 : i32 to index
    %c0 = arith.constant 0 : index
    %c0_0 = arith.constant 0 : index
    %2 = vector.load %arg2[%1, %c0, %c0_0] : memref<4x128x128xf32, #tpu.memory_space<vmem>>, vector<1x128x128xf32>
    %3 = vector.shape_cast %2 : vector<1x128x128xf32> to vector<128x128xf32>
    %4 = arith.addf %0, %3 : vector<128x128xf32>
    %5 = arith.mulf %3, %3 : vector<128x128xf32>
    %6 = arith.addf %0, %5 : vector<128x128xf32>
    %c1_i32 = arith.constant 1 : i32
    %7 = arith.index_cast %c1_i32 : i32 to index
    %c0_1 = arith.constant 0 : index
    %c0_2 = arith.constant 0 : index
    %8 = vector.load %arg2[%7, %c0_1, %c0_2] : memref<4x128x128xf32, #tpu.memory_space<vmem>>, vector<1x128x128xf32>
    %9 = vector.shape_cast %8 : vector<1x128x128xf32> to vector<128x128xf32>
    %10 = arith.addf %4, %9 : vector<128x128xf32>
    %11 = arith.mulf %9, %9 : vector<128x128xf32>
    %12 = arith.addf %6, %11 : vector<128x128xf32>
    %c2_i32 = arith.constant 2 : i32
    %13 = arith.index_cast %c2_i32 : i32 to index
    %c0_3 = arith.constant 0 : index
    %c0_4 = arith.constant 0 : index
    %14 = vector.load %arg2[%13, %c0_3, %c0_4] : memref<4x128x128xf32, #tpu.memory_space<vmem>>, vector<1x128x128xf32>
    %15 = vector.shape_cast %14 : vector<1x128x128xf32> to vector<128x128xf32>
    %16 = arith.addf %10, %15 : vector<128x128xf32>
    %17 = arith.mulf %15, %15 : vector<128x128xf32>
    %18 = arith.addf %12, %17 : vector<128x128xf32>
    %c3_i32 = arith.constant 3 : i32
    %19 = arith.index_cast %c3_i32 : i32 to index
    %c0_5 = arith.constant 0 : index
    %c0_6 = arith.constant 0 : index
    %20 = vector.load %arg2[%19, %c0_5, %c0_6] : memref<4x128x128xf32, #tpu.memory_space<vmem>>, vector<1x128x128xf32>
    %21 = vector.shape_cast %20 : vector<1x128x128xf32> to vector<128x128xf32>
    %22 = arith.addf %16, %21 : vector<128x128xf32>
    %23 = arith.mulf %21, %21 : vector<128x128xf32>
    %24 = arith.addf %18, %23 : vector<128x128xf32>
    %c4_i32 = arith.constant 4 : i32
    %25 = arith.mulf %22, %22 : vector<128x128xf32>
    %26 = arith.subf %25, %24 : vector<128x128xf32>
    %cst_7 = arith.constant dense<0.000000e+00> : vector<128xf32>
    %27 = vector.multi_reduction <add>, %26, %cst_7 [1] : vector<128x128xf32> to vector<128xf32>
    %cst_8 = arith.constant 5.000000e-01 : f32
    %28 = vector.broadcast %cst_8 : f32 to vector<128xf32>
    %29 = arith.mulf %28, %27 : vector<128xf32>
    %c0_9 = arith.constant 0 : index
    %c0_10 = arith.constant 0 : index
    %30 = vector.load %arg3[%c0_9, %c0_10] : memref<4x128xf32, #tpu.memory_space<vmem>>, vector<4x128xf32>
    %cst_11 = arith.constant dense<0.000000e+00> : vector<128xf32>
    %31 = vector.multi_reduction <add>, %30, %cst_11 [0] : vector<4x128xf32> to vector<128xf32>
    %c0_12 = arith.constant 0 : index
    %32 = memref.load %arg1[%c0_12] : memref<2xf32, #tpu.memory_space<smem>>
    %33 = vector.broadcast %32 : f32 to vector<128xf32>
    %34 = arith.mulf %31, %33 : vector<128xf32>
    %c1 = arith.constant 1 : index
    %35 = memref.load %arg1[%c1] : memref<2xf32, #tpu.memory_space<smem>>
    %36 = vector.broadcast %35 : f32 to vector<128xf32>
    %37 = arith.addf %34, %36 : vector<128xf32>
    %38 = arith.addf %37, %29 : vector<128xf32>
    %39 = vector.shape_cast %38 : vector<128xf32> to vector<1x128xf32>
    %c0_13 = arith.constant 0 : index
    %c0_14 = arith.constant 0 : index
    %40 = vector.load %arg4[%c0_13, %c0_14] : memref<1x128xf32, #tpu.memory_space<vmem>>, vector<1x128xf32>
    tpu.vector_store %arg4[%c0_13, %c0_14], %39 {strides = array<i32>} : memref<1x128xf32, #tpu.memory_space<vmem>>, vector<1x128xf32>,
    return
  }
  func.func @transform_0(%arg0: i32) -> i32 {
    %c0_i32 = arith.constant 0 : i32
    %c0_i32_0 = arith.constant 0 : i32
    return %c0_i32 : i32
  }
  func.func @transform_1(%arg0: i32) -> (i32, i32, i32) {
    %c0_i32 = arith.constant 0 : i32
    %c0_i32_0 = arith.constant 0 : i32
    %c0_i32_1 = arith.constant 0 : i32
    return %c0_i32, %arg0, %c0_i32_0 : i32, i32, i32
  }
  func.func @transform_2(%arg0: i32) -> (i32, i32) {
    %c0_i32 = arith.constant 0 : i32
    %c0_i32_0 = arith.constant 0 : i32
    return %c0_i32, %arg0 : i32, i32
  }
  func.func @transform_3(%arg0: i32) -> (i32, i32) {
    %c0_i32 = arith.constant 0 : i32
    %c0_i32_0 = arith.constant 0 : i32
    return %arg0, %c0_i32 : i32, i32
  }
}

</mosaic_0001>

<bundles_post_ra>
// kernel: tpu_custom_call.1
= control target key start
LH: loop header
LB: loop body
LE: loop exit
PB: predicated region body
PF: predicated region fallthrough
CT: control target
= control target key end

     0   :  { %8 = vsyncpa [#allocation5], 0  ;;  %s712_s0 = inlined_call_operand.hbm [shape: f32[2], index: 0, kind: input, shape index: {}]   ;;  %s713_s1 = inlined_call_operand.hbm [shape: f32[4,128,128], index: 1, kind: input, shape index: {}]   ;;  %s714_s2 = inlined_call_operand.vmem [shape: f32[4,128], index: 2, kind: input, shape index: {}]   ;;  %s715_s3 = inlined_call_operand.hbm [shape: f32[1,128], index: 3, kind: output, shape index: {}]  }
   0x1   :  { %9 = vsyncpa [#allocation3], 0 }
   0x2   :  { %10 = vsyncpa [#allocation4], 0  ;;  %s546_s14 = scalar_lea.hbm %s712_s0, 16 }
   0x3   :  { %p547_p0 = scmp.ne.s32.totalorder %s712_s0, %s546_s14  ;;  %p550_p1 = scmp.lt.u32.totalorder %s546_s14, %s712_s0 }
   0x5   :  { %p552_p2 = pnand %p550_p1, %p547_p0 }
   0x7   :  { %555 = shalt.err (!%p552_p2)
}
   0x8   :  { %s606_s19 = smov [#allocation2]   ;;  %s607_s22 = smov [#allocation6]  }
   0x9   :  { %18 = dma.hbm_to_smem %s712_s0, 16, %s606_s19, [#allocation5]  }
   0xa   :  { %s24_s23 = sshll.u32 %s607_s22, 4  ;;  %s556_s26 = scalar_lea.hbm %s713_s1, 8192  ;;  %s25_s23 = int_to_ptr.vmem [resolvable:$true] %s24_s23 }
   0xb   :  { %p557_p3 = scmp.ne.s32.totalorder %s713_s1, %s556_s26  ;;  %p560_p4 = scmp.lt.u32.totalorder %s556_s26, %s713_s1 }
   0xd   :  { %p562_p5 = pnand %p560_p4, %p557_p3 }
   0xf   :  { %565 = shalt.err (!%p562_p5)
}
  0x10   :  { %s566_s4 = scalar_lea.vmem %s25_s23, 8192  ;;  %p571_p7 = scmp.lt.s32.totalorder %s25_s23, %s25_s23 }
  0x11   :  { %p567_p6 = scmp.ne.s32.totalorder %s25_s23, %s566_s4  ;;  %p572_p8 = scmp.lt.s32.totalorder %s566_s4, %s566_s4 }
  0x13   :  { %p573_p9 = por %p572_p8, %p571_p7 }
  0x15   :  { %p574_p10 = pnand %p573_p9, %p567_p6 }
  0x17   :  { %577 = shalt.err (!%p574_p10)
}
  0x18   :  { %s608_s0 = smov 128   ;;  %s609_s5 = smov 8  }
  0x19   :  { %30 = dma.hbm_to_vmem [thread:$0]  %s713_s1, 8192, %s25_s23, [#allocation3], %s608_s0, %s608_s0, %s609_s5  }
  0x1a   :  { %600 = dma.done.wait [#allocation5], 16  }
  0x1b   :  { %601 = vsyncadd [#allocation5], 4294967280 }
  0x1c   :  { %602 = dma.done.wait [#allocation3], 8192  }
  0x1d   :  { %603 = vsyncadd [#allocation3], 4294959104 }
  0x1e   :  { %39 = sfence }
  0x1f   :  { %v40_v0 = vld [vmem:[#allocation6] sm:$0xff]  ;;  %v42_v8 = vld [vmem:[#allocation6 + $0x10] sm:$0xff]  ;;  %v41_v16 = vld [vmem:[#allocation6 + $0x8] sm:$0xff]  ;;  %vm380_vm0 = vcmask 1043456   ;;  %vm421_vm1 = vcmask 130112   ;;  %vm428_vm2 = vcmask 195712  }
  0x20   :  { %v105_v1 = vld [vmem:[#allocation6 + $0x80] sm:$0xff]  ;;  %v72_v3 = vmul.f32 %v40_v0, %v40_v0  ;;  %v107_v9 = vld [vmem:[#allocation6 + $0x90] sm:$0xff]  ;;  %v74_v11 = vmul.f32 %v42_v8, %v42_v8  ;;  %v106_v21 = vld [vmem:[#allocation6 + $0x88] sm:$0xff]  ;;  %v73_v26 = vmul.f32 %v41_v16, %v41_v16  ;;  %vm435_vm3 = vcmask 261312   ;;  %s540_s9 = sld [smem:[#allocation2 + $0x1]]  ;;  %s610_s10 = smov [#allocation7]  }
  0x21   :  { %v170_v2 = vld [vmem:[#allocation6 + $0x100] sm:$0xff]  ;;  %v121_v4 = vadd.f32 %v105_v1, %v40_v0  ;;  %v137_v5 = vmul.f32 %v105_v1, %v105_v1  ;;  %v123_v12 = vadd.f32 %v107_v9, %v42_v8  ;;  %v139_v13 = vmul.f32 %v107_v9, %v107_v9  ;;  %v172_v14 = vld [vmem:[#allocation6 + $0x110] sm:$0xff]  ;;  %v171_v22 = vld [vmem:[#allocation6 + $0x108] sm:$0xff]  ;;  %s530_s11 = sshll.u32 %s610_s10, 4  ;;  %s531_s11 = int_to_ptr.vmem [resolvable:$true] %s530_s11 }
  0x22   :  { %v202_v6 = vmul.f32 %v170_v2, %v170_v2  ;;  %v235_v7 = vld [vmem:[#allocation6 + $0x180] sm:$0xff]  ;;  %v237_v15 = vld [vmem:[#allocation6 + $0x190] sm:$0xff]  ;;  %v204_v19 = vmul.f32 %v172_v14, %v172_v14  ;;  %v236_v23 = vld [vmem:[#allocation6 + $0x188] sm:$0xff]  ;;  %v122_v27 = vadd.f32 %v106_v21, %v41_v16  ;;  %v138_v31 = vmul.f32 %v106_v21, %v106_v21  ;;  %s578_s12 = scalar_lea.vmem %s531_s11, 16  ;;  %s582_s13 = scalar_lea.vmem %s531_s11, 32 }
  0x23   :  { %v267_v10 = vmul.f32 %v235_v7, %v235_v7  ;;  %v153_v17 = vadd.f32 %v137_v5, %v72_v3  ;;  %v186_v18 = vadd.f32 %v170_v2, %v121_v4  ;;  %v269_v20 = vmul.f32 %v237_v15, %v237_v15  ;;  %v43_v28 = vld [vmem:[#allocation6 + $0x18] sm:$0xff]  ;;  %v44_v48 = vld [vmem:[#allocation6 + $0x20] sm:$0xff]  ;;  %v45_v60 = vld [vmem:[#allocation6 + $0x28] sm:$0xff]  ;;  %p579_p11 = scmp.ne.s32.totalorder %s531_s11, %s578_s12  ;;  %p583_p12 = scmp.lt.s32.totalorder %s531_s11, %s531_s11 }
  0x24   :  { %v155_v24 = vadd.f32 %v139_v13, %v74_v11  ;;  %v188_v25 = vadd.f32 %v172_v14, %v123_v12  ;;  %v203_v32 = vmul.f32 %v171_v22, %v171_v22  ;;  %v108_v33 = vld [vmem:[#allocation6 + $0x98] sm:$0xff]  ;;  %v187_v36 = vadd.f32 %v171_v22, %v122_v27  ;;  %v109_v49 = vld [vmem:[#allocation6 + $0xa0] sm:$0xff]  ;;  %v110_v1 = vld [vmem:[#allocation6 + $0xa8] sm:$0xff]  ;;  %p584_p13 = scmp.lt.s32.totalorder %s582_s13, %s578_s12 }
  0x25   :  { %v218_v29 = vadd.f32 %v202_v6, %v153_v17  ;;  %v251_v30 = vadd.f32 %v235_v7, %v186_v18  ;;  %v268_v37 = vmul.f32 %v236_v23, %v236_v23  ;;  %v173_v38 = vld [vmem:[#allocation6 + $0x118] sm:$0xff]  ;;  %v154_v41 = vadd.f32 %v138_v31, %v73_v26  ;;  %v174_v54 = vld [vmem:[#allocation6 + $0x120] sm:$0xff]  ;;  %v175_v6 = vld [vmem:[#allocation6 + $0x128] sm:$0xff] }
  0x26   :  { %v220_v34 = vadd.f32 %v204_v19, %v155_v24  ;;  %v253_v35 = vadd.f32 %v237_v15, %v188_v25  ;;  %v75_v42 = vmul.f32 %v43_v28, %v43_v28  ;;  %v238_v43 = vld [vmem:[#allocation6 + $0x198] sm:$0xff]  ;;  %v252_v46 = vadd.f32 %v236_v23, %v187_v36  ;;  %v239_v55 = vld [vmem:[#allocation6 + $0x1a0] sm:$0xff]  ;;  %v240_v7 = vld [vmem:[#allocation6 + $0x1a8] sm:$0xff]  ;;  %p585_p0 = por %p584_p13, %p583_p12 }
  0x27   :  { %v283_v39 = vadd.f32 %v267_v10, %v218_v29  ;;  %v299_v40 = vmul.f32 %v251_v30, %v251_v30  ;;  %v124_v47 = vadd.f32 %v108_v33, %v43_v28  ;;  %v219_v51 = vadd.f32 %v203_v32, %v154_v41  ;;  %v46_v12 = vld [vmem:[#allocation6 + $0x30] sm:$0xff]  ;;  %v47_v28 = vld [vmem:[#allocation6 + $0x38] sm:$0xff] }
  0x28   :  { %v285_v44 = vadd.f32 %v269_v20, %v220_v34  ;;  %v301_v45 = vmul.f32 %v253_v35, %v253_v35  ;;  %v140_v52 = vmul.f32 %v108_v33, %v108_v33  ;;  %v205_v53 = vmul.f32 %v173_v38, %v173_v38  ;;  %v111_v17 = vld [vmem:[#allocation6 + $0xb0] sm:$0xff]  ;;  %v112_v33 = vld [vmem:[#allocation6 + $0xb8] sm:$0xff]  ;;  %p586_p1 = pnand %p585_p0, %p579_p11 }
  0x29   :  { %v315_v50 = vsub.f32 %v299_v40, %v283_v39  ;;  %v300_v57 = vmul.f32 %v252_v46, %v252_v46  ;;  %v189_v58 = vadd.f32 %v173_v38, %v124_v47  ;;  %v270_v59 = vmul.f32 %v238_v43, %v238_v43  ;;  %v176_v22 = vld [vmem:[#allocation6 + $0x130] sm:$0xff]  ;;  %v177_v38 = vld [vmem:[#allocation6 + $0x138] sm:$0xff] }
  0x2a   :  { %v317_v56 = vsub.f32 %v301_v45, %v285_v44  ;;  %v284_v61 = vadd.f32 %v268_v37, %v219_v51  ;;  %v156_v62 = vadd.f32 %v140_v52, %v75_v42  ;;  %v76_v63 = vmul.f32 %v44_v48, %v44_v48  ;;  %v241_v27 = vld [vmem:[#allocation6 + $0x1b0] sm:$0xff]  ;;  %v48_v44 = vld [vmem:[#allocation6 + $0x40] sm:$0xff] }
  0x2b   :  { %331 = vadd.xlane.f32.xlu0 %v315_v50  ;;  %v125_v0 = vadd.f32 %v109_v49, %v44_v48  ;;  %v254_v2 = vadd.f32 %v238_v43, %v189_v58  ;;  %v141_v3 = vmul.f32 %v109_v49, %v109_v49  ;;  %v206_v4 = vmul.f32 %v174_v54, %v174_v54  ;;  %v242_v43 = vld [vmem:[#allocation6 + $0x1b8] sm:$0xff]  ;;  %v113_v49 = vld [vmem:[#allocation6 + $0xc0] sm:$0xff] }
  0x2c   :  { %335 = vadd.xlane.f32.xlu1 %v317_v56  ;;  %v271_v5 = vmul.f32 %v239_v55, %v239_v55  ;;  %v316_v8 = vsub.f32 %v300_v57, %v284_v61  ;;  %v221_v9 = vadd.f32 %v205_v53, %v156_v62  ;;  %v77_v11 = vmul.f32 %v45_v60, %v45_v60 }
  0x2d   :  { %v190_v10 = vadd.f32 %v174_v54, %v125_v0  ;;  %v302_v13 = vmul.f32 %v254_v2, %v254_v2  ;;  %v157_v14 = vadd.f32 %v141_v3, %v76_v63  ;;  %v126_v15 = vadd.f32 %v110_v1, %v45_v60  ;;  %v178_v54 = vld [vmem:[#allocation6 + $0x140] sm:$0xff]  ;;  %v49_v60 = vld [vmem:[#allocation6 + $0x48] sm:$0xff] }
  0x2e   :  { %v142_v16 = vmul.f32 %v110_v1, %v110_v1  ;;  %v286_v18 = vadd.f32 %v270_v59, %v221_v9  ;;  %v207_v20 = vmul.f32 %v175_v6, %v175_v6  ;;  %v272_v21 = vmul.f32 %v240_v7, %v240_v7  ;;  %v114_v1 = vld [vmem:[#allocation6 + $0xc8] sm:$0xff] }
  0x2f   :  { %333 = vadd.xlane.f32.xlu0 %v316_v8  ;;  %v255_v19 = vadd.f32 %v239_v55, %v190_v10  ;;  %v222_v23 = vadd.f32 %v206_v4, %v157_v14  ;;  %v191_v25 = vadd.f32 %v175_v6, %v126_v15  ;;  %v78_v26 = vmul.f32 %v46_v12, %v46_v12  ;;  %v243_v55 = vld [vmem:[#allocation6 + $0x1c0] sm:$0xff]  ;;  %v179_v6 = vld [vmem:[#allocation6 + $0x148] sm:$0xff] }
  0x30   :  { %v158_v24 = vadd.f32 %v142_v16, %v77_v11  ;;  %v318_v29 = vsub.f32 %v302_v13, %v286_v18  ;;  %v127_v31 = vadd.f32 %v111_v17, %v46_v12  ;;  %v143_v32 = vmul.f32 %v111_v17, %v111_v17  ;;  %v50_v12 = vld [vmem:[#allocation6 + $0x50] sm:$0xff] }
  0x31   :  { %v303_v30 = vmul.f32 %v255_v19, %v255_v19  ;;  %v287_v34 = vadd.f32 %v271_v5, %v222_v23  ;;  %v256_v36 = vadd.f32 %v240_v7, %v191_v25  ;;  %v208_v37 = vmul.f32 %v176_v22, %v176_v22  ;;  %v244_v7 = vld [vmem:[#allocation6 + $0x1c8] sm:$0xff]  ;;  %v115_v17 = vld [vmem:[#allocation6 + $0xd0] sm:$0xff] }
  0x32   :  { %v223_v35 = vadd.f32 %v207_v20, %v158_v24  ;;  %337 = vadd.xlane.f32.xlu1 %v318_v29  ;;  %v159_v39 = vadd.f32 %v143_v32, %v78_v26  ;;  %v192_v40 = vadd.f32 %v176_v22, %v127_v31  ;;  %v273_v41 = vmul.f32 %v241_v27, %v241_v27  ;;  %v180_v22 = vld [vmem:[#allocation6 + $0x150] sm:$0xff] }
  0x33   :  { %v79_v42 = vmul.f32 %v47_v28, %v47_v28  ;;  %v319_v45 = vsub.f32 %v303_v30, %v287_v34  ;;  %v304_v47 = vmul.f32 %v256_v36, %v256_v36  ;;  %v128_v48 = vadd.f32 %v112_v33, %v47_v28  ;;  %v51_v28 = vld [vmem:[#allocation6 + $0x58] sm:$0xff] }
  0x34   :  { %v288_v46 = vadd.f32 %v272_v21, %v223_v35  ;;  %v224_v50 = vadd.f32 %v208_v37, %v159_v39  ;;  %v257_v51 = vadd.f32 %v241_v27, %v192_v40  ;;  %v144_v52 = vmul.f32 %v112_v33, %v112_v33  ;;  %v245_v27 = vld [vmem:[#allocation6 + $0x1d0] sm:$0xff]  ;;  %v116_v33 = vld [vmem:[#allocation6 + $0xd8] sm:$0xff] }
  0x35   :  { %v209_v53 = vmul.f32 %v177_v38, %v177_v38  ;;  %339 = vadd.xlane.f32.xlu0 %v319_v45  ;;  %v193_v57 = vadd.f32 %v177_v38, %v128_v48  ;;  %v274_v58 = vmul.f32 %v242_v43, %v242_v43  ;;  %v80_v59 = vmul.f32 %v48_v44, %v48_v44  ;;  %v181_v38 = vld [vmem:[#allocation6 + $0x158] sm:$0xff] }
  0x36   :  { %v320_v56 = vsub.f32 %v304_v47, %v288_v46  ;;  %v289_v61 = vadd.f32 %v273_v41, %v224_v50  ;;  %v305_v62 = vmul.f32 %v257_v51, %v257_v51  ;;  %v160_v63 = vadd.f32 %v144_v52, %v79_v42 }
  0x37   :  { %v129_v0 = vadd.f32 %v113_v49, %v48_v44  ;;  %v258_v2 = vadd.f32 %v242_v43, %v193_v57  ;;  %v145_v3 = vmul.f32 %v113_v49, %v113_v49  ;;  %v210_v4 = vmul.f32 %v178_v54, %v178_v54  ;;  %v246_v43 = vld [vmem:[#allocation6 + $0x1d8] sm:$0xff]  ;;  %v52_v44 = vld [vmem:[#allocation6 + $0x60] sm:$0xff] }
  0x38   :  { %341 = vadd.xlane.f32.xlu1 %v320_v56  ;;  %v275_v5 = vmul.f32 %v243_v55, %v243_v55  ;;  %v321_v8 = vsub.f32 %v305_v62, %v289_v61  ;;  %v225_v9 = vadd.f32 %v209_v53, %v160_v63  ;;  %v81_v11 = vmul.f32 %v49_v60, %v49_v60  ;;  %v117_v49 = vld [vmem:[#allocation6 + $0xe0] sm:$0xff] }
  0x39   :  { %v194_v10 = vadd.f32 %v178_v54, %v129_v0  ;;  %v306_v13 = vmul.f32 %v258_v2, %v258_v2  ;;  %v161_v14 = vadd.f32 %v145_v3, %v80_v59  ;;  %v130_v15 = vadd.f32 %v114_v1, %v49_v60  ;;  %v182_v54 = vld [vmem:[#allocation6 + $0x160] sm:$0xff]  ;;  %v53_v60 = vld [vmem:[#allocation6 + $0x68] sm:$0xff] }
  0x3a   :  { %v146_v16 = vmul.f32 %v114_v1, %v114_v1  ;;  %343 = vadd.xlane.f32.xlu0 %v321_v8  ;;  %v290_v18 = vadd.f32 %v274_v58, %v225_v9  ;;  %v211_v20 = vmul.f32 %v179_v6, %v179_v6  ;;  %v276_v21 = vmul.f32 %v244_v7, %v244_v7  ;;  %v118_v1 = vld [vmem:[#allocation6 + $0xe8] sm:$0xff] }
  0x3b   :  { %v259_v19 = vadd.f32 %v243_v55, %v194_v10  ;;  %v226_v23 = vadd.f32 %v210_v4, %v161_v14  ;;  %v195_v25 = vadd.f32 %v179_v6, %v130_v15  ;;  %v82_v26 = vmul.f32 %v50_v12, %v50_v12  ;;  %v247_v55 = vld [vmem:[#allocation6 + $0x1e0] sm:$0xff]  ;;  %v183_v6 = vld [vmem:[#allocation6 + $0x168] sm:$0xff] }
  0x3c   :  { %v162_v24 = vadd.f32 %v146_v16, %v81_v11  ;;  %v322_v29 = vsub.f32 %v306_v13, %v290_v18  ;;  %v131_v31 = vadd.f32 %v115_v17, %v50_v12  ;;  %v147_v32 = vmul.f32 %v115_v17, %v115_v17  ;;  %v54_v12 = vld [vmem:[#allocation6 + $0x70] sm:$0xff] }
  0x3d   :  { %v307_v30 = vmul.f32 %v259_v19, %v259_v19  ;;  %v291_v34 = vadd.f32 %v275_v5, %v226_v23  ;;  %v260_v36 = vadd.f32 %v244_v7, %v195_v25  ;;  %v212_v37 = vmul.f32 %v180_v22, %v180_v22  ;;  %v248_v7 = vld [vmem:[#allocation6 + $0x1e8] sm:$0xff]  ;;  %v119_v17 = vld [vmem:[#allocation6 + $0xf0] sm:$0xff] }
  0x3e   :  { %v227_v35 = vadd.f32 %v211_v20, %v162_v24  ;;  %345 = vadd.xlane.f32.xlu1 %v322_v29  ;;  %v163_v39 = vadd.f32 %v147_v32, %v82_v26  ;;  %v196_v40 = vadd.f32 %v180_v22, %v131_v31  ;;  %v277_v41 = vmul.f32 %v245_v27, %v245_v27  ;;  %v184_v22 = vld [vmem:[#allocation6 + $0x170] sm:$0xff] }
  0x3f   :  { %v83_v42 = vmul.f32 %v51_v28, %v51_v28  ;;  %v323_v45 = vsub.f32 %v307_v30, %v291_v34  ;;  %v308_v47 = vmul.f32 %v260_v36, %v260_v36  ;;  %v132_v48 = vadd.f32 %v116_v33, %v51_v28  ;;  %v55_v28 = vld [vmem:[#allocation6 + $0x78] sm:$0xff] }
  0x40   :  { %v292_v46 = vadd.f32 %v276_v21, %v227_v35  ;;  %v228_v50 = vadd.f32 %v212_v37, %v163_v39  ;;  %v261_v51 = vadd.f32 %v245_v27, %v196_v40  ;;  %v148_v52 = vmul.f32 %v116_v33, %v116_v33  ;;  %v249_v27 = vld [vmem:[#allocation6 + $0x1f0] sm:$0xff]  ;;  %v120_v33 = vld [vmem:[#allocation6 + $0xf8] sm:$0xff] }
  0x41   :  { %v213_v53 = vmul.f32 %v181_v38, %v181_v38  ;;  %347 = vadd.xlane.f32.xlu0 %v323_v45  ;;  %v197_v57 = vadd.f32 %v181_v38, %v132_v48  ;;  %v278_v58 = vmul.f32 %v246_v43, %v246_v43  ;;  %v84_v59 = vmul.f32 %v52_v44, %v52_v44  ;;  %v185_v38 = vld [vmem:[#allocation6 + $0x178] sm:$0xff] }
  0x42   :  { %v324_v56 = vsub.f32 %v308_v47, %v292_v46  ;;  %v293_v61 = vadd.f32 %v277_v41, %v228_v50  ;;  %v309_v62 = vmul.f32 %v261_v51, %v261_v51  ;;  %v164_v63 = vadd.f32 %v148_v52, %v83_v42  ;;  %v250_v47 = vld [vmem:[#allocation6 + $0x1f8] sm:$0xff] }
  0x43   :  { %v133_v0 = vadd.f32 %v117_v49, %v52_v44  ;;  %v262_v2 = vadd.f32 %v246_v43, %v197_v57  ;;  %v149_v3 = vmul.f32 %v117_v49, %v117_v49  ;;  %v214_v4 = vmul.f32 %v182_v54, %v182_v54 }
  0x44   :  { %349 = vadd.xlane.f32.xlu1 %v324_v56  ;;  %v279_v5 = vmul.f32 %v247_v55, %v247_v55  ;;  %v325_v8 = vsub.f32 %v309_v62, %v293_v61  ;;  %v229_v9 = vadd.f32 %v213_v53, %v164_v63  ;;  %v85_v11 = vmul.f32 %v53_v60, %v53_v60 }
  0x45   :  { %v198_v10 = vadd.f32 %v182_v54, %v133_v0  ;;  %v310_v13 = vmul.f32 %v262_v2, %v262_v2  ;;  %v165_v14 = vadd.f32 %v149_v3, %v84_v59  ;;  %v134_v15 = vadd.f32 %v118_v1, %v53_v60 }
  0x46   :  { %v150_v16 = vmul.f32 %v118_v1, %v118_v1  ;;  %351 = vadd.xlane.f32.xlu0 %v325_v8  ;;  %v294_v18 = vadd.f32 %v278_v58, %v229_v9  ;;  %v215_v20 = vmul.f32 %v183_v6, %v183_v6  ;;  %v280_v21 = vmul.f32 %v248_v7, %v248_v7 }
  0x47   :  { %v263_v19 = vadd.f32 %v247_v55, %v198_v10  ;;  %v230_v23 = vadd.f32 %v214_v4, %v165_v14  ;;  %v199_v25 = vadd.f32 %v183_v6, %v134_v15  ;;  %v86_v26 = vmul.f32 %v54_v12, %v54_v12  ;;  %v379_v15 = vld [vmem:[%s714_s2] sm:$0xf]  ;;  %s687_s2 = sld [smem:[#allocation2]] }
  0x48   :  { %v166_v24 = vadd.f32 %v150_v16, %v85_v11  ;;  %v326_v29 = vsub.f32 %v310_v13, %v294_v18  ;;  %v135_v31 = vadd.f32 %v119_v17, %v54_v12  ;;  %v151_v32 = vmul.f32 %v119_v17, %v119_v17 }
  0x49   :  { %v311_v30 = vmul.f32 %v263_v19, %v263_v19  ;;  %v295_v34 = vadd.f32 %v279_v5, %v230_v23  ;;  %v264_v36 = vadd.f32 %v248_v7, %v199_v25  ;;  %v216_v37 = vmul.f32 %v184_v22, %v184_v22 }
  0x4a   :  { %v231_v35 = vadd.f32 %v215_v20, %v166_v24  ;;  %353 = vadd.xlane.f32.xlu1 %v326_v29  ;;  %v167_v39 = vadd.f32 %v151_v32, %v86_v26  ;;  %v200_v40 = vadd.f32 %v184_v22, %v135_v31  ;;  %v281_v41 = vmul.f32 %v249_v27, %v249_v27 }
  0x4b   :  { %v87_v42 = vmul.f32 %v55_v28, %v55_v28  ;;  %v327_v43 = vsub.f32 %v311_v30, %v295_v34  ;;  %v312_v45 = vmul.f32 %v264_v36, %v264_v36  ;;  %v136_v46 = vadd.f32 %v120_v33, %v55_v28 }
  0x4c   :  { %v296_v44 = vadd.f32 %v280_v21, %v231_v35  ;;  %v232_v48 = vadd.f32 %v216_v37, %v167_v39  ;;  %v265_v49 = vadd.f32 %v249_v27, %v200_v40  ;;  %v152_v50 = vmul.f32 %v120_v33, %v120_v33 }
  0x4d   :  { %v217_v51 = vmul.f32 %v185_v38, %v185_v38  ;;  %355 = vadd.xlane.f32.xlu0 %v327_v43  ;;  %v201_v53 = vadd.f32 %v185_v38, %v136_v46  ;;  %v282_v57 = vmul.f32 %v250_v47, %v250_v47  ;;  %v410_v0 = vlaneseq }
  0x4e   :  { %v328_v52 = vsub.f32 %v312_v45, %v296_v44  ;;  %v297_v54 = vadd.f32 %v281_v41, %v232_v48  ;;  %v313_v55 = vmul.f32 %v265_v49, %v265_v49  ;;  %v168_v56 = vadd.f32 %v152_v50, %v87_v42 }
  0x4f   :  { %v266_v58 = vadd.f32 %v250_v47, %v201_v53  ;;  %v655_v3 = vand.u32 127, %v410_v0  ;;  %v658_v6 = vshrl.u32 %v410_v0, 7  ;;  %v381_v24 = vsel %vm380_vm0, %v379_v15, 0.0 }
  0x50   :  { %357 = vadd.xlane.f32.xlu1 %v328_v52  ;;  %v329_v59 = vsub.f32 %v313_v55, %v297_v54  ;;  %v233_v60 = vadd.f32 %v217_v51, %v168_v56  ;;  %v382_v32 = vrot.slane %v381_v24, 4  ;;  %vm442_vm4 = vcmask 326912  }
  0x51   :  { %v314_v61 = vmul.f32 %v266_v58, %v266_v58  ;;  %v416_v4 = vadd.s32 4294967288, %v655_v3  ;;  %v423_v10 = vadd.s32 4294967280, %v655_v3  ;;  %v414_v11 = vsub.s32 %v655_v3, %v658_v6 }
  0x52   :  { %359 = vadd.xlane.f32.xlu0 %v329_v59  ;;  %v298_v62 = vadd.f32 %v282_v57, %v233_v60  ;;  %v430_v13 = vadd.s32 4294967272, %v655_v3  ;;  %v437_v19 = vadd.s32 4294967264, %v655_v3  ;;  %v444_v26 = vadd.s32 4294967256, %v655_v3 }
  0x53   :  { %v419_v8 = vsub.s32 %v416_v4, %v658_v6  ;;  %v426_v17 = vsub.s32 %v423_v10, %v658_v6  ;;  %v451_v27 = vadd.s32 4294967248, %v655_v3  ;;  %v458_v38 = vadd.s32 4294967240, %v655_v3 }
  0x54   :  { %v330_v63 = vsub.f32 %v314_v61, %v298_v62  ;;  %v433_v22 = vsub.s32 %v430_v13, %v658_v6  ;;  %v440_v30 = vsub.s32 %v437_v19, %v658_v6  ;;  %v447_v36 = vsub.s32 %v444_v26, %v658_v6 }
  0x55   :  { %v465_v39 = vadd.s32 4294967232, %v655_v3  ;;  %v454_v41 = vsub.s32 %v451_v27, %v658_v6  ;;  %v383_v43 = vadd.f32 %v382_v32, %v381_v24  ;;  %vm449_vm5 = vcmask 392512  }
  0x56   :  { %361 = vadd.xlane.f32.xlu1 %v330_v63  ;;  %v472_v46 = vadd.s32 4294967224, %v655_v3  ;;  %v479_v47 = vadd.s32 4294967216, %v655_v3  ;;  %v461_v49 = vsub.s32 %v458_v38, %v658_v6  ;;  %vm456_vm6 = vcmask 458112  }
  0x57   :  { %v468_v51 = vsub.s32 %v465_v39, %v658_v6  ;;  %v384_v56 = vrot.slane %v383_v43, 2  ;;  %vm463_vm7 = vcmask 523712   ;;  %v486_v60 = vadd.s32 4294967208, %v655_v3 }
  0x58   :  { %v475_v57 = vsub.s32 %v472_v46, %v658_v6  ;;  %v482_v58 = vsub.s32 %v479_v47, %v658_v6  ;;  %v493_v0 = vadd.s32 4294967200, %v655_v3  ;;  %vm470_vm8 = vcmask 589312  }
  0x59   :  { %vm477_vm9 = vcmask 654912   ;;  %vm484_vm10 = vcmask 720512   ;;  %vm491_vm11 = vcmask 786112   ;;  %vm498_vm12 = vcmask 851712  }
  0x5a   :  { %v496_v15 = vsub.s32 %v493_v0, %v658_v6  ;;  %vm505_vm13 = vcmask 917312   ;;  %v392_v39 = vstv %s540_s9  ;;  %vm512_vm14 = vcmask 982912  }
  0x5b   :  { %vm519_vm15 = vcmask 1048512  }
  0xb8   :  { %v332_v1 = vpop.xlane.xlu0 %331 }
  0xb9   :  { %v336_v2 = vpop.xlane.xlu1 %335  ;;  %v363_v12 = vmul.f32 0.5, %v332_v1 }
  0xba   :  { %v365_v18 = vmul.f32 0.5, %v336_v2 }
  0xbb   :  { %v415_v21 = vrot.slane %v363_v12, %v414_v11  ;;  %v500_v12 = vadd.s32 4294967192, %v655_v3 }
  0xbc   :  { %v334_v5 = vpop.xlane.xlu0 %333  ;;  %v427_v29 = vrot.slane %v365_v18, %v426_v17  ;;  %v507_v18 = vadd.s32 4294967184, %v655_v3 }
  0xbd   :  { %v364_v9 = vmul.f32 0.5, %v334_v5  ;;  %v385_v5 = vadd.f32 %v384_v56, %v383_v43 }
  0xbf   :  { %v338_v7 = vpop.xlane.xlu1 %337  ;;  %v420_v16 = vrot.slane %v364_v9, %v419_v8 }
  0xc0   :  { %v366_v23 = vmul.f32 0.5, %v338_v7  ;;  %v489_v7 = vsub.s32 %v486_v60, %v658_v6 }
  0xc1   :  { %v422_v25 = vsel %vm421_vm1, %v420_v16, %v415_v21  ;;  %v386_v16 = vrot.slane %v385_v5, 1 }
  0xc2   :  { %v340_v14 = vpop.xlane.xlu0 %339  ;;  %v434_v33 = vrot.slane %v366_v23, %v433_v22  ;;  %v429_v34 = vsel %vm428_vm2, %v427_v29, %v422_v25  ;;  %v503_v22 = vsub.s32 %v500_v12, %v658_v6  ;;  %v514_v29 = vadd.s32 4294967176, %v655_v3 }
  0xc3   :  { %v367_v31 = vmul.f32 0.5, %v340_v14  ;;  %v387_v27 = vadd.f32 %v386_v16, %v385_v5 }
  0xc4   :  { %v436_v44 = vsel %vm435_vm3, %v434_v33, %v429_v34  ;;  %v517_v38 = vsub.s32 %v514_v29, %v658_v6 }
  0xc5   :  { %v342_v20 = vpop.xlane.xlu1 %341  ;;  %v441_v40 = vrot.slane %v367_v31, %v440_v30  ;;  %v389_v30 = vstv %s687_s2 }
  0xc6   :  { %v368_v37 = vmul.f32 0.5, %v342_v20 }
  0xc7   :  { %v344_v28 = vpop.xlane.xlu0 %343  ;;  %v443_v52 = vsel %vm442_vm4, %v441_v40, %v436_v44 }
  0xc8   :  { %v369_v42 = vmul.f32 0.5, %v344_v28  ;;  %v448_v48 = vrot.slane %v368_v37, %v447_v36  ;;  %v510_v28 = vsub.s32 %v507_v18, %v658_v6  ;;  %v390_v36 = vmul.f32 %v389_v30, %v387_v27 }
  0xca   :  { %v455_v53 = vrot.slane %v369_v42, %v454_v41  ;;  %v450_v61 = vsel %vm449_vm5, %v448_v48, %v443_v52  ;;  %v393_v43 = vadd.f32 %v392_v39, %v390_v36 }
  0xcb   :  { %v346_v35 = vpop.xlane.xlu1 %345 }
  0xcc   :  { %v370_v50 = vmul.f32 0.5, %v346_v35  ;;  %v457_v1 = vsel %vm456_vm6, %v455_v53, %v450_v61 }
  0xce   :  { %v348_v45 = vpop.xlane.xlu0 %347  ;;  %v462_v62 = vrot.slane %v370_v50, %v461_v49 }
  0xcf   :  { %v371_v54 = vmul.f32 0.5, %v348_v45 }
  0xd0   :  { %v464_v9 = vsel %vm463_vm7, %v462_v62, %v457_v1 }
  0xd1   :  { %v350_v55 = vpop.xlane.xlu1 %349  ;;  %v469_v2 = vrot.slane %v371_v54, %v468_v51 }
  0xd2   :  { %v372_v63 = vmul.f32 0.5, %v350_v55 }
  0xd3   :  { %v352_v59 = vpop.xlane.xlu0 %351  ;;  %v471_v13 = vsel %vm470_vm8, %v469_v2, %v464_v9 }
  0xd4   :  { %v373_v4 = vmul.f32 0.5, %v352_v59  ;;  %v476_v10 = vrot.slane %v372_v63, %v475_v57 }
  0xd6   :  { %v483_v14 = vrot.slane %v373_v4, %v482_v58  ;;  %v478_v20 = vsel %vm477_vm9, %v476_v10, %v471_v13 }
  0xd7   :  { %v354_v8 = vpop.xlane.xlu1 %353 }
  0xd8   :  { %v374_v11 = vmul.f32 0.5, %v354_v8  ;;  %v485_v24 = vsel %vm484_vm10, %v483_v14, %v478_v20 }
  0xda   :  { %v356_v17 = vpop.xlane.xlu0 %355  ;;  %v490_v21 = vrot.slane %v374_v11, %v489_v7 }
  0xdb   :  { %v375_v19 = vmul.f32 0.5, %v356_v17 }
  0xdc   :  { %v492_v32 = vsel %vm491_vm11, %v490_v21, %v485_v24 }
  0xdd   :  { %v358_v23 = vpop.xlane.xlu1 %357  ;;  %v497_v25 = vrot.slane %v375_v19, %v496_v15 }
  0xde   :  { %v376_v26 = vmul.f32 0.5, %v358_v23 }
  0xdf   :  { %v360_v31 = vpop.xlane.xlu0 %359  ;;  %v499_v35 = vsel %vm498_vm12, %v497_v25, %v492_v32 }
  0xe0   :  { %v504_v33 = vrot.slane %v376_v26, %v503_v22  ;;  %v377_v34 = vmul.f32 0.5, %v360_v31 }
  0xe2   :  { %v511_v37 = vrot.slane %v377_v34, %v510_v28  ;;  %v506_v42 = vsel %vm505_vm13, %v504_v33, %v499_v35 }
  0xe3   :  { %v362_v40 = vpop.xlane.xlu1 %361 }
  0xe4   :  { %v378_v41 = vmul.f32 0.5, %v362_v40  ;;  %v513_v44 = vsel %vm512_vm14, %v511_v37, %v506_v42 }
  0xe6   :  { %v518_v3 = vrot.slane %v378_v41, %v517_v38 }
  0xe8   :  { %v520_v45 = vsel %vm519_vm15, %v518_v3, %v513_v44 }
  0xe9   :  { %v522_v46 = vadd.f32 %v520_v45, %v393_v43 }
  0xeb   :  { %523 = vst [vmem:[#allocation7] sm:$0x1] %v522_v46 }
  0xec   :  { %589 = shalt.err (!%p586_p1)
}
  0xed   :  { %s590_s16 = scalar_lea.hbm %s715_s3, 16 }
  0xee   :  { %p591_p2 = scmp.ne.s32.totalorder %s715_s3, %s590_s16  ;;  %p594_p3 = scmp.lt.u32.totalorder %s590_s16, %s715_s3 }
  0xf0   :  { %p596_p4 = pnand %p594_p3, %p591_p2 }
  0xf2   :  { %599 = shalt.err (!%p596_p4)
}
  0xf3   :  { %533 = dma.vmem_to_hbm [thread:$0]  %s531_s11, 16, %s715_s3, [#allocation4]  }
  0xf4   :  { %604 = dma.done.wait [#allocation4], 16  }
  0xf5   :  { %605 = vsyncadd [#allocation4], 4294967280 }
  0xf6   :  { %537 = vsyncpa [#allocation3], 1 }
  0xf7   :  { %538 = vsyncpa [#allocation4], 1 }
  0xf8   :  { %539 = vsyncpa [#allocation5], 1 }

</bundles_post_ra>
